<compile_context>
chip_gen: v7x
topology: tpu7x:2x2x1
jax: 0.10.0
libtpu: 0.0.40
codegen_flags: <defaults>
</compile_context>

<pallas_src>
import functools

import jax
import jax.numpy as jnp
from jax.experimental import pallas as pl
from jax.experimental.pallas import tpu as pltpu


def _ca_kernel(x_ref, w1_ref, b1_ref, w2_ref, b2_ref, o_ref, *, channels, hw):
    """x_ref / o_ref: (TB, C*HW); channel c occupies lanes [c*hw, (c+1)*hw)."""
    inv_hw = 1.0 / hw

    # ---- Adaptive avg / max pool per (batch row, channel strip) -> (TB, C).
    # Static lane slices of the tile; batches stay on sublanes so the gate
    # comes out in the same row layout as x (no relayouts of big data).
    avg_cols = []
    max_cols = []
    for c in range(channels):           # small, static C (module config: C=4)
        strip = x_ref[:, c * hw:(c + 1) * hw].astype(jnp.float32)   # (TB, HW)
        avg_cols.append(jnp.sum(strip, axis=1, keepdims=True) * inv_hw)
        max_cols.append(jnp.max(strip, axis=1, keepdims=True))
    avg = jnp.concatenate(avg_cols, axis=1)                          # (TB, C)
    mx = jnp.concatenate(max_cols, axis=1)                           # (TB, C)

    # ---- Shared MLP on both branches, raw weights (no kron / block-diag).
    w1t = w1_ref[...].T                                              # (C, R)
    w2t = w2_ref[...].T                                              # (R, C)
    b1 = b1_ref[...]                                                 # (1, R)
    b2 = b2_ref[...]                                                 # (1, C)

    h_avg = jnp.maximum(jnp.dot(avg, w1t, preferred_element_type=jnp.float32) + b1, 0.0)
    h_max = jnp.maximum(jnp.dot(mx, w1t, preferred_element_type=jnp.float32) + b1, 0.0)
    # y_avg + y_max: fc2 is linear, each branch carries its own bias -> 2*b2.
    y = jnp.dot(h_avg + h_max, w2t, preferred_element_type=jnp.float32) + 2.0 * b2
    gate = jax.nn.sigmoid(y)                                         # (TB, C)

    # ---- Apply the per-(batch, channel) gate; broadcast over the HW lanes of
    # each channel strip.  Stores are lane-dense (hw is a 128-multiple here).
    for c in range(channels):
        g = gate[:, c:c + 1]                                         # (TB, 1)
        o_ref[:, c * hw:(c + 1) * hw] = (
            x_ref[:, c * hw:(c + 1) * hw] * g).astype(o_ref.dtype)


def _round_up(v, m):
    return -(-v // m) * m


@functools.lru_cache(maxsize=None)
def _tpu_vmem_capacity_bytes():
    try:
        return int(pltpu.get_tpu_info().vmem_capacity_bytes)
    except Exception:
        return 64 * 1024 * 1024        # conservative fallback: assume v7x-class


def _tile_params(B, chw, itemsize):
    """Pick (batches-per-tile, vmem_limit_bytes), generation-aware.

    Pure HBM-streaming op (read x, write x): use the biggest x tile that still
    leaves room for 2x-in + 2x-out double buffering plus small weights.
    """
    vmem_cap = _tpu_vmem_capacity_bytes()
    if vmem_cap <= 64 * 1024 * 1024:               # v7x-class: 64 MiB / TC
        tile_budget, vmem_limit = 4 << 20, 48 << 20
    else:                                          # v5e / v6e: 128 MiB physical
        tile_budget, vmem_limit = 8 << 20, 64 << 20

    row_bytes = _round_up(chw, 128) * itemsize     # lane-padded row in VMEM
    total = B * row_bytes

    if total <= (2 << 20) or B <= 8:
        # Tiny tensor (or batch too small to split into 8-row-aligned tiles):
        # a single block -> one DMA in, one DMA out.
        return B, vmem_limit

    # >=2 grid steps (even count when possible) so both v7x TensorCores get
    # work under dimension_semantics=("parallel",).
    n_tiles = max(2, pl.cdiv(total, tile_budget))
    if n_tiles % 2:
        n_tiles += 1
    tb = _round_up(pl.cdiv(B, n_tiles), 8)         # sublane-aligned tile rows
    return min(tb, B), vmem_limit


def _ca_layer_impl(x, w1, b1, w2, b2, tb, vmem_limit):
    B, C, H, W = x.shape
    R = w1.shape[0]
    HW = H * W
    CHW = C * HW

    x2 = x.reshape(B, CHW)                         # free: batches x (C*HW) lanes
    n_tiles = pl.cdiv(B, tb)

    kernel = functools.partial(_ca_kernel, channels=C, hw=HW)

    out2 = pl.pallas_call(
        kernel,
        out_shape=jax.ShapeDtypeStruct((B, CHW), x2.dtype),
        grid_spec=pltpu.PrefetchScalarGridSpec(
            num_scalar_prefetch=0,
            grid=(n_tiles,),
            in_specs=[
                pl.BlockSpec((tb, CHW), lambda i: (i, 0)),   # x tile
                pl.BlockSpec((R, C), lambda i: (0, 0)),      # fc1 weight (raw)
                pl.BlockSpec((1, R), lambda i: (0, 0)),      # fc1 bias
                pl.BlockSpec((C, R), lambda i: (0, 0)),      # fc2 weight (raw)
                pl.BlockSpec((1, C), lambda i: (0, 0)),      # fc2 bias
            ],
            out_specs=pl.BlockSpec((tb, CHW), lambda i: (i, 0)),
        ),
        compiler_params=pltpu.CompilerParams(
            dimension_semantics=("parallel",),     # independent batch groups
            vmem_limit_bytes=vmem_limit,
        ),
        input_output_aliases={0: 0},               # gate x in place (reuse HBM)
    )(x2, w1, b1.reshape(1, R), w2, b2.reshape(1, C))

    return out2.reshape(B, C, H, W)


_ca_layer_jit = jax.jit(_ca_layer_impl, static_argnums=(5, 6), donate_argnums=(0,))


def ca_layer(x, w1, b1, w2, b2, *, tile_batches=None):
    """CALayer forward.  x: (B,C,H,W) f32; w1: (R,C), b1: (R,), w2: (C,R), b2: (C,).

    NOTE: x's buffer is donated/aliased into the output; do not reuse x after.
    `tile_batches` (multiple of 8, or >= B) overrides the auto tile size (tests).
    """
    B, C, H, W = x.shape
    tb_auto, vmem_limit = _tile_params(B, C * H * W, x.dtype.itemsize)
    tb = tb_auto if tile_batches is None else min(tile_batches, B)
    return _ca_layer_jit(x, w1, b1, w2, b2, tb, vmem_limit)


def ca_layer_ref(x, w1, b1, w2, b2):
    """Plain-JAX reference mirroring the PyTorch forward."""
    avg = jnp.mean(x, axis=(2, 3))                 # (B, C)
    mx = jnp.max(x, axis=(2, 3))                   # (B, C)

    def mlp(p):                                    # p: (B, C)
        h = jnp.maximum(p @ w1.T + b1, 0.0)        # (B, R)
        return h @ w2.T + b2                       # (B, C)

    y = jax.nn.sigmoid(mlp(avg) + mlp(mx))         # (B, C)
    return x * y[:, :, None, None]


if __name__ == "__main__":
    # Module config: channel=4, reduction=16 (default); input (2, 4, 16, 16).
    B, C, H, W = 2, 4, 16, 16
    R = 16

    key = jax.random.PRNGKey(0)
    kx, k1, k2, k3, k4, kx2 = jax.random.split(key, 6)

    x = jax.random.normal(kx, (B, C, H, W), dtype=jnp.float32)
    # fc1: Conv2d(C, R, 1) weight (R, C, 1, 1) -> (R, C); bias (R,)
    w1 = jax.random.normal(k1, (R, C), dtype=jnp.float32) * 0.2
    b1 = jax.random.normal(k2, (R,), dtype=jnp.float32) * 0.1
    # fc2: Conv2d(R, C, 1) weight (C, R, 1, 1) -> (C, R); bias (C,)
    w2 = jax.random.normal(k3, (C, R), dtype=jnp.float32) * 0.2
    b2 = jax.random.normal(k4, (C,), dtype=jnp.float32) * 0.1

    # Compute references BEFORE the kernel calls (the kernel donates x).
    ref = jax.block_until_ready(ca_layer_ref(x, w1, b1, w2, b2))
    out = jax.block_until_ready(ca_layer(x, w1, b1, w2, b2))
    assert out.shape == (B, C, H, W)
    assert jnp.allclose(out, ref, atol=1e-5, rtol=1e-5), "single-block path mismatch"

    # Multi-tile path: B not divisible by the tile -> 2-step grid with a
    # partial last block, exercising masked writeback under output aliasing.
    B2 = 12
    x2 = jax.random.normal(kx2, (B2, C, H, W), dtype=jnp.float32)
    ref2 = jax.block_until_ready(ca_layer_ref(x2, w1, b1, w2, b2))
    out2 = jax.block_until_ready(ca_layer(x2, w1, b1, w2, b2, tile_batches=8))
    assert out2.shape == (B2, C, H, W)
    assert jnp.allclose(out2, ref2, atol=1e-5, rtol=1e-5), "multi-tile path mismatch"

    print("KERNEL_OK")
</pallas_src>

<mosaic_0001>
module attributes {stable_mosaic.version = 11 : i64} {
  func.func @_ca_kernel(%arg0: i32, %arg1: memref<2x1024xf32, #tpu.memory_space<vmem>>, %arg2: memref<16x4xf32, #tpu.memory_space<vmem>>, %arg3: memref<1x16xf32, #tpu.memory_space<vmem>>, %arg4: memref<4x16xf32, #tpu.memory_space<vmem>>, %arg5: memref<1x4xf32, #tpu.memory_space<vmem>>, %arg6: memref<2x1024xf32, #tpu.memory_space<vmem>>) attributes {dimension_semantics = [#tpu.dimension_semantics<parallel>], iteration_bounds = array<i64: 1>, scalar_prefetch = 0 : i64, scratch_operands = 0 : i64, tpu.core_type = #tpu.core_type<tc>, window_params = [{transform_indices = @transform_0, window_bounds = array<i64: 2, 1024>}, {pipeline_mode = #tpu.pipeline_mode<synchronous>, transform_indices = @transform_1, window_bounds = array<i64: 16, 4>}, {pipeline_mode = #tpu.pipeline_mode<synchronous>, transform_indices = @transform_2, window_bounds = array<i64: 1, 16>}, {pipeline_mode = #tpu.pipeline_mode<synchronous>, transform_indices = @transform_3, window_bounds = array<i64: 4, 16>}, {pipeline_mode = #tpu.pipeline_mode<synchronous>, transform_indices = @transform_4, window_bounds = array<i64: 1, 4>}, {transform_indices = @transform_5, window_bounds = array<i64: 2, 1024>}]} {
    %c0 = arith.constant 0 : index
    %c0_0 = arith.constant 0 : index
    %0 = vector.load %arg1[%c0, %c0_0] : memref<2x1024xf32, #tpu.memory_space<vmem>>, vector<2x256xf32>
    %cst = arith.constant dense<0.000000e+00> : vector<2xf32>
    %1 = vector.multi_reduction <add>, %0, %cst [1] : vector<2x256xf32> to vector<2xf32>
    %2 = vector.shape_cast %1 : vector<2xf32> to vector<2x1xf32>
    %cst_1 = arith.constant 3.906250e-03 : f32
    %3 = vector.broadcast %cst_1 : f32 to vector<2x1xf32>
    %4 = arith.mulf %2, %3 : vector<2x1xf32>
    %cst_2 = arith.constant dense<0xFF800000> : vector<2xf32>
    %5 = vector.multi_reduction <maximumf>, %0, %cst_2 [1] : vector<2x256xf32> to vector<2xf32>
    %6 = vector.shape_cast %5 : vector<2xf32> to vector<2x1xf32>
    %c0_3 = arith.constant 0 : index
    %c256 = arith.constant 256 : index
    %7 = vector.load %arg1[%c0_3, %c256] : memref<2x1024xf32, #tpu.memory_space<vmem>>, vector<2x256xf32>
    %cst_4 = arith.constant dense<0.000000e+00> : vector<2xf32>
    %8 = vector.multi_reduction <add>, %7, %cst_4 [1] : vector<2x256xf32> to vector<2xf32>
    %9 = vector.shape_cast %8 : vector<2xf32> to vector<2x1xf32>
    %cst_5 = arith.constant 3.906250e-03 : f32
    %10 = vector.broadcast %cst_5 : f32 to vector<2x1xf32>
    %11 = arith.mulf %9, %10 : vector<2x1xf32>
    %cst_6 = arith.constant dense<0xFF800000> : vector<2xf32>
    %12 = vector.multi_reduction <maximumf>, %7, %cst_6 [1] : vector<2x256xf32> to vector<2xf32>
    %13 = vector.shape_cast %12 : vector<2xf32> to vector<2x1xf32>
    %c0_7 = arith.constant 0 : index
    %c512 = arith.constant 512 : index
    %14 = vector.load %arg1[%c0_7, %c512] : memref<2x1024xf32, #tpu.memory_space<vmem>>, vector<2x256xf32>
    %cst_8 = arith.constant dense<0.000000e+00> : vector<2xf32>
    %15 = vector.multi_reduction <add>, %14, %cst_8 [1] : vector<2x256xf32> to vector<2xf32>
    %16 = vector.shape_cast %15 : vector<2xf32> to vector<2x1xf32>
    %cst_9 = arith.constant 3.906250e-03 : f32
    %17 = vector.broadcast %cst_9 : f32 to vector<2x1xf32>
    %18 = arith.mulf %16, %17 : vector<2x1xf32>
    %cst_10 = arith.constant dense<0xFF800000> : vector<2xf32>
    %19 = vector.multi_reduction <maximumf>, %14, %cst_10 [1] : vector<2x256xf32> to vector<2xf32>
    %20 = vector.shape_cast %19 : vector<2xf32> to vector<2x1xf32>
    %c0_11 = arith.constant 0 : index
    %c768 = arith.constant 768 : index
    %21 = vector.load %arg1[%c0_11, %c768] : memref<2x1024xf32, #tpu.memory_space<vmem>>, vector<2x256xf32>
    %cst_12 = arith.constant dense<0.000000e+00> : vector<2xf32>
    %22 = vector.multi_reduction <add>, %21, %cst_12 [1] : vector<2x256xf32> to vector<2xf32>
    %23 = vector.shape_cast %22 : vector<2xf32> to vector<2x1xf32>
    %cst_13 = arith.constant 3.906250e-03 : f32
    %24 = vector.broadcast %cst_13 : f32 to vector<2x1xf32>
    %25 = arith.mulf %23, %24 : vector<2x1xf32>
    %cst_14 = arith.constant dense<0xFF800000> : vector<2xf32>
    %26 = vector.multi_reduction <maximumf>, %21, %cst_14 [1] : vector<2x256xf32> to vector<2xf32>
    %27 = vector.shape_cast %26 : vector<2xf32> to vector<2x1xf32>
    %28 = tpu.concatenate %4, %11, %18, %25 in 1 : vector<2x1xf32>, vector<2x1xf32>, vector<2x1xf32>, vector<2x1xf32> -> vector<2x4xf32>
    %29 = tpu.concatenate %6, %13, %20, %27 in 1 : vector<2x1xf32>, vector<2x1xf32>, vector<2x1xf32>, vector<2x1xf32> -> vector<2x4xf32>
    %c0_15 = arith.constant 0 : index
    %c0_16 = arith.constant 0 : index
    %30 = vector.load %arg2[%c0_15, %c0_16] : memref<16x4xf32, #tpu.memory_space<vmem>>, vector<16x4xf32>
    %31 = tpu.transpose %30, [1, 0] : vector<16x4xf32> -> vector<4x16xf32>
    %c0_17 = arith.constant 0 : index
    %c0_18 = arith.constant 0 : index
    %32 = vector.load %arg4[%c0_17, %c0_18] : memref<4x16xf32, #tpu.memory_space<vmem>>, vector<4x16xf32>
    %33 = tpu.transpose %32, [1, 0] : vector<4x16xf32> -> vector<16x4xf32>
    %c0_19 = arith.constant 0 : index
    %c0_20 = arith.constant 0 : index
    %34 = vector.load %arg3[%c0_19, %c0_20] : memref<1x16xf32, #tpu.memory_space<vmem>>, vector<1x16xf32>
    %c0_21 = arith.constant 0 : index
    %c0_22 = arith.constant 0 : index
    %35 = vector.load %arg5[%c0_21, %c0_22] : memref<1x4xf32, #tpu.memory_space<vmem>>, vector<1x4xf32>
    %cst_23 = arith.constant dense<0.000000e+00> : vector<2x16xf32>
    %36 = tpu.matmul %28, %31, %cst_23 {dimension_numbers = #tpu.dot_dimension_numbers<[1], [0], [0], [1], [0, 0, 1, 1], [], []>} : vector<2x4xf32>, vector<4x16xf32>, vector<2x16xf32> -> vector<2x16xf32>
    %37 = vector.broadcast %34 : vector<1x16xf32> to vector<2x16xf32>
    %38 = arith.addf %36, %37 : vector<2x16xf32>
    %cst_24 = arith.constant 0.000000e+00 : f32
    %39 = vector.broadcast %cst_24 : f32 to vector<2x16xf32>
    %40 = arith.maximumf %38, %39 : vector<2x16xf32>
    %cst_25 = arith.constant dense<0.000000e+00> : vector<2x16xf32>
    %41 = tpu.matmul %29, %31, %cst_25 {dimension_numbers = #tpu.dot_dimension_numbers<[1], [0], [0], [1], [0, 0, 1, 1], [], []>} : vector<2x4xf32>, vector<4x16xf32>, vector<2x16xf32> -> vector<2x16xf32>
    %42 = vector.broadcast %34 : vector<1x16xf32> to vector<2x16xf32>
    %43 = arith.addf %41, %42 : vector<2x16xf32>
    %cst_26 = arith.constant 0.000000e+00 : f32
    %44 = vector.broadcast %cst_26 : f32 to vector<2x16xf32>
    %45 = arith.maximumf %43, %44 : vector<2x16xf32>
    %46 = arith.addf %40, %45 : vector<2x16xf32>
    %cst_27 = arith.constant dense<0.000000e+00> : vector<2x4xf32>
    %47 = tpu.matmul %46, %33, %cst_27 {dimension_numbers = #tpu.dot_dimension_numbers<[1], [0], [0], [1], [0, 0, 1, 1], [], []>} : vector<2x16xf32>, vector<16x4xf32>, vector<2x4xf32> -> vector<2x4xf32>
    %cst_28 = arith.constant 2.000000e+00 : f32
    %48 = vector.broadcast %cst_28 : f32 to vector<1x4xf32>
    %49 = arith.mulf %48, %35 : vector<1x4xf32>
    %50 = vector.broadcast %49 : vector<1x4xf32> to vector<2x4xf32>
    %51 = arith.addf %47, %50 : vector<2x4xf32>
    %52 = arith.negf %51 : vector<2x4xf32>
    %53 = math.exp %52 : vector<2x4xf32>
    %cst_29 = arith.constant 1.000000e+00 : f32
    %54 = vector.broadcast %cst_29 : f32 to vector<2x4xf32>
    %55 = arith.addf %54, %53 : vector<2x4xf32>
    %56 = arith.divf %54, %55 : vector<2x4xf32>
    %57 = vector.extract_strided_slice %56 {offsets = [0, 0], sizes = [2, 1], strides = [1, 1]} : vector<2x4xf32> to vector<2x1xf32>
    %c0_30 = arith.constant 0 : index
    %c0_31 = arith.constant 0 : index
    %58 = vector.load %arg1[%c0_30, %c0_31] : memref<2x1024xf32, #tpu.memory_space<vmem>>, vector<2x256xf32>
    %59 = vector.broadcast %57 : vector<2x1xf32> to vector<2x256xf32>
    %60 = arith.mulf %58, %59 : vector<2x256xf32>
    %c0_32 = arith.constant 0 : index
    %c0_33 = arith.constant 0 : index
    %61 = vector.load %arg6[%c0_32, %c0_33] : memref<2x1024xf32, #tpu.memory_space<vmem>>, vector<2x256xf32>
    tpu.vector_store %arg6[%c0_32, %c0_33], %60 {strides = array<i32>} : memref<2x1024xf32, #tpu.memory_space<vmem>>, vector<2x256xf32>,
    %62 = vector.extract_strided_slice %56 {offsets = [0, 1], sizes = [2, 1], strides = [1, 1]} : vector<2x4xf32> to vector<2x1xf32>
    %c0_34 = arith.constant 0 : index
    %c256_35 = arith.constant 256 : index
    %63 = vector.load %arg1[%c0_34, %c256_35] : memref<2x1024xf32, #tpu.memory_space<vmem>>, vector<2x256xf32>
    %64 = vector.broadcast %62 : vector<2x1xf32> to vector<2x256xf32>
    %65 = arith.mulf %63, %64 : vector<2x256xf32>
    %c0_36 = arith.constant 0 : index
    %c256_37 = arith.constant 256 : index
    %66 = vector.load %arg6[%c0_36, %c256_37] : memref<2x1024xf32, #tpu.memory_space<vmem>>, vector<2x256xf32>
    tpu.vector_store %arg6[%c0_36, %c256_37], %65 {strides = array<i32>} : memref<2x1024xf32, #tpu.memory_space<vmem>>, vector<2x256xf32>,
    %67 = vector.extract_strided_slice %56 {offsets = [0, 2], sizes = [2, 1], strides = [1, 1]} : vector<2x4xf32> to vector<2x1xf32>
    %c0_38 = arith.constant 0 : index
    %c512_39 = arith.constant 512 : index
    %68 = vector.load %arg1[%c0_38, %c512_39] : memref<2x1024xf32, #tpu.memory_space<vmem>>, vector<2x256xf32>
    %69 = vector.broadcast %67 : vector<2x1xf32> to vector<2x256xf32>
    %70 = arith.mulf %68, %69 : vector<2x256xf32>
    %c0_40 = arith.constant 0 : index
    %c512_41 = arith.constant 512 : index
    %71 = vector.load %arg6[%c0_40, %c512_41] : memref<2x1024xf32, #tpu.memory_space<vmem>>, vector<2x256xf32>
    tpu.vector_store %arg6[%c0_40, %c512_41], %70 {strides = array<i32>} : memref<2x1024xf32, #tpu.memory_space<vmem>>, vector<2x256xf32>,
    %72 = vector.extract_strided_slice %56 {offsets = [0, 3], sizes = [2, 1], strides = [1, 1]} : vector<2x4xf32> to vector<2x1xf32>
    %c0_42 = arith.constant 0 : index
    %c768_43 = arith.constant 768 : index
    %73 = vector.load %arg1[%c0_42, %c768_43] : memref<2x1024xf32, #tpu.memory_space<vmem>>, vector<2x256xf32>
    %74 = vector.broadcast %72 : vector<2x1xf32> to vector<2x256xf32>
    %75 = arith.mulf %73, %74 : vector<2x256xf32>
    %c0_44 = arith.constant 0 : index
    %c768_45 = arith.constant 768 : index
    %76 = vector.load %arg6[%c0_44, %c768_45] : memref<2x1024xf32, #tpu.memory_space<vmem>>, vector<2x256xf32>
    tpu.vector_store %arg6[%c0_44, %c768_45], %75 {strides = array<i32>} : memref<2x1024xf32, #tpu.memory_space<vmem>>, vector<2x256xf32>,
    return
  }
  func.func @transform_0(%arg0: i32) -> (i32, i32) {
    %c0_i32 = arith.constant 0 : i32
    %c0_i32_0 = arith.constant 0 : i32
    return %arg0, %c0_i32 : i32, i32
  }
  func.func @transform_1(%arg0: i32) -> (i32, i32) {
    %c0_i32 = arith.constant 0 : i32
    %c0_i32_0 = arith.constant 0 : i32
    %c0_i32_1 = arith.constant 0 : i32
    return %c0_i32, %c0_i32_0 : i32, i32
  }
  func.func @transform_2(%arg0: i32) -> (i32, i32) {
    %c0_i32 = arith.constant 0 : i32
    %c0_i32_0 = arith.constant 0 : i32
    %c0_i32_1 = arith.constant 0 : i32
    return %c0_i32, %c0_i32_0 : i32, i32
  }
  func.func @transform_3(%arg0: i32) -> (i32, i32) {
    %c0_i32 = arith.constant 0 : i32
    %c0_i32_0 = arith.constant 0 : i32
    %c0_i32_1 = arith.constant 0 : i32
    return %c0_i32, %c0_i32_0 : i32, i32
  }
  func.func @transform_4(%arg0: i32) -> (i32, i32) {
    %c0_i32 = arith.constant 0 : i32
    %c0_i32_0 = arith.constant 0 : i32
    %c0_i32_1 = arith.constant 0 : i32
    return %c0_i32, %c0_i32_0 : i32, i32
  }
  func.func @transform_5(%arg0: i32) -> (i32, i32) {
    %c0_i32 = arith.constant 0 : i32
    %c0_i32_0 = arith.constant 0 : i32
    return %arg0, %c0_i32 : i32, i32
  }
}

</mosaic_0001>

<bundles_post_ra>
// kernel: _ca_layer_impl.1
= control target key start
LH: loop header
LB: loop body
LE: loop exit
PB: predicated region body
PF: predicated region fallthrough
CT: control target
= control target key end

     0   :  { %vm32_vm0 = vcmask 1041408   ;;  %v25_v0 = vlaneseq  ;;  %v505_v2 = vmov 1983009808   ;;  %vm133_vm1 = vcmask 31744   ;;  %s624_s0 = inlined_call_operand.vmem [shape: f32[2,1024], index: 0, kind: input, shape index: {}, may-alias: {0,5}]   ;;  %s625_s1 = inlined_call_operand.vmem [shape: f32[16,4], index: 1, kind: input, shape index: {}]   ;;  %s626_s3 = inlined_call_operand.vmem [shape: f32[4,16], index: 3, kind: input, shape index: {}]   ;;  %s627_s2 = inlined_call_operand.vmem [shape: f32[1,16], index: 2, kind: input, shape index: {}]   ;;  %s628_s4 = inlined_call_operand.vmem [shape: f32[1,4], index: 4, kind: input, shape index: {}]   ;;  %s629_s5 = inlined_call_operand.vmem [shape: f32[2,1024], index: 5, kind: output, shape index: {}, may-alias: {0,5}]  }
   0x1   :  { %v440_v1 = vld.sshfl [vmem:[%s624_s0 + $0x8] sm:$0x33 pattern:$0x76325410]  ;;  %v23_v3 = vunpack.c.l.s4 %v505_v2  ;;  %v563_v16 = vld [vmem:[%s624_s0] sm:$0xf]  ;;  %vm481_vm2 = vmpackc.low %vm133_vm1, %vm133_vm1 }
   0x2   :  { %v76_v4 = vcombine.high %v440_v1, %v440_v1  ;;  %v79_v5 = vsel %vm32_vm0, %v440_v1, 0.0  ;;  %v439_v6 = vld.sshfl [vmem:[%s624_s0 + $0x4] sm:$0x33 pattern:$0x76325410]  ;;  %v551_v7 = vshrl.u32 %v25_v0, 7 }
   0x3   :  { %v53_v8 = vcombine.high %v439_v6, %v439_v6  ;;  %v56_v9 = vsel %vm32_vm0, %v439_v6, 0.0  ;;  %v441_v10 = vld.sshfl [vmem:[%s624_s0 + $0xc] sm:$0x33 pattern:$0x76325410]  ;;  %v24_v11 = vunpack.c.0.s8 %v23_v3  ;;  %v62_v15 = vsel %vm32_vm0, %v439_v6, -inf }
   0x4   :  { %v80_v12 = vsel %vm32_vm0, %v76_v4, 0.0  ;;  %v99_v13 = vcombine.high %v441_v10, %v441_v10  ;;  %v102_v14 = vsel %vm32_vm0, %v441_v10, 0.0  ;;  %v108_v33 = vsel %vm32_vm0, %v441_v10, -inf  ;;  %v122_v39 = vld [vmem:[%s625_s1] sm:$0xff]  ;;  %v123_v40 = vld [vmem:[%s625_s1 + $0x8] sm:$0xff] }
   0x5   :  { %v81_v17 = vadd.f32 %v80_v12, %v79_v5  ;;  %v57_v18 = vsel %vm32_vm0, %v53_v8, 0.0  ;;  %v63_v19 = vsel %vm32_vm0, %v53_v8, -inf  ;;  %v27_v20 = vsub.s32 %v24_v11, %v551_v7  ;;  %v124_v62 = vld [vmem:[%s626_s3] sm:$0xf] }
   0x6   :  { %v58_v21 = vadd.f32 %v57_v18, %v56_v9  ;;  %v103_v22 = vsel %vm32_vm0, %v99_v13, 0.0  ;;  %v64_v25 = vmax.f32 %v62_v15, %v63_v19  ;;  %v109_v34 = vsel %vm32_vm0, %v99_v13, -inf  ;;  %v442_v63 = vld [vmem:[%s627_s2] ss:$0 sm:$0xff] }
   0x7   :  { %82 = vadd.xlane.f32.xlu1 %v81_v17  ;;  %v104_v23 = vadd.f32 %v103_v22, %v102_v14  ;;  %v28_v24 = vrot.slane %v563_v16, %v27_v20  ;;  %v85_v35 = vsel %vm32_vm0, %v440_v1, -inf  ;;  %v86_v36 = vsel %vm32_vm0, %v76_v4, -inf  ;;  %v126_v12 = vld [vmem:[%s628_s4] sm:$0x1] }
   0x8   :  { %59 = vadd.xlane.f32.xlu0 %v58_v21  ;;  %v110_v37 = vmax.f32 %v108_v33, %v109_v34  ;;  %v87_v38 = vmax.f32 %v85_v35, %v86_v36  ;;  %v506_v41 = vmov 0.0|0.0   ;;  %v480_v42 = vpack.c.bf16 %v123_v40, %v122_v39 }
   0x9   :  { %v29_v26 = vcombine.high %v28_v24, %v28_v24  ;;  %v39_v27 = vsel %vm32_vm0, %v28_v24, -inf  ;;  %v33_v28 = vsel %vm32_vm0, %v28_v24, 0.0  ;;  %479 = vmatprep.subr.bf16.mxu0 %v506_v41  ;;  %483 = vmatprep.subr.bf16.mxu1 %v506_v41  ;;  %vm507_vm3 = vmmov 0  }
   0xa   :  { %482 = vmatpush3.bf16.xpose.msk.msra.mxu0 %vm481_vm2, %v480_v42  ;;  %486 = vmatpush3.bf16.xpose.msk.msra.mxu1 %vm481_vm2, %v480_v42  ;;  %v508_v43 = vmov 0.0   ;;  %vm113_vm4 = vcmask 7168   ;;  %vm115_vm5 = vcmask 15360   ;;  %vm117_vm6 = vcmask 23552  }
   0xb   :  { %105 = vadd.xlane.f32.xlu1 %v104_v23  ;;  %v40_v29 = vsel %vm32_vm0, %v29_v26, -inf  ;;  %v34_v30 = vsel %vm32_vm0, %v29_v26, 0.0  ;;  %464 = vmatprep.mubr.msk.f32.mxu0 %vm507_vm3, %v508_v43  ;;  %vm296_vm7 = vcmask 130048   ;;  %v509_v10 = vmov 1  }
   0xc   :  { %65 = vmax.xlane.f32.xlu0 %v64_v25  ;;  %v41_v31 = vmax.f32 %v39_v27, %v40_v29  ;;  %v35_v32 = vadd.f32 %v34_v30, %v33_v28  ;;  %471 = vmatprep.mubr.msk.f32.mxu1 %vm507_vm3, %v508_v43  ;;  %v510_v11 = vmov 0   ;;  %v289_v13 = vmul.f32 2.0, %v126_v12  ;;  %v393_v30 = vld [vmem:[%s624_s0 + $0x4] sm:$0xf] }
   0xd   :  { %474 = vmatprep.subr.mxu0 %v508_v43  ;;  %497 = vset.pattern.permute.xlu1 %v509_v10  ;;  %v293_v14 = vsub.s32 0, %v551_v7  ;;  %v511_v24 = vmov 2   ;;  %v512_v25 = vmov 3   ;;  %v513_v26 = vmov 269488144  }
   0xe   :  { %496 = vset.pattern.permute.xlu0 %v510_v11  ;;  %v384_v27 = vunpack.c.l.s4 %v513_v26 }
   0xf   :  { %42 = vmax.xlane.f32.xlu1 %v41_v31  ;;  %v294_v15 = vrot.slane %v289_v13, %v293_v14 }
  0x10   :  { %36 = vadd.xlane.f32.xlu0 %v35_v32  ;;  %v385_v28 = vunpack.c.0.s8 %v384_v27 }
  0x12   :  { %v388_v29 = vsub.s32 %v385_v28, %v551_v7 }
  0x13   :  { %111 = vmax.xlane.f32.xlu1 %v110_v37 }
  0x14   :  { %88 = vmax.xlane.f32.xlu0 %v87_v38 }
  0x94   :  { %v83_v44 = vpop.xlane.xlu1 %82 }
  0x95   :  { %v60_v45 = vpop.xlane.xlu0 %59  ;;  %v84_v52 = vmul.f32 0.00390625, %v83_v44 }
  0x96   :  { %v61_v50 = vmul.f32 0.00390625, %v60_v45 }
  0x98   :  { %v106_v46 = vpop.xlane.xlu1 %105 }
  0x99   :  { %v66_v47 = vpop.xlane.xlu0 %65  ;;  %v107_v53 = vmul.f32 0.00390625, %v106_v46 }
  0x9c   :  { %v43_v48 = vpop.xlane.xlu1 %42 }
  0x9d   :  { %v37_v49 = vpop.xlane.xlu0 %36  ;;  %v119_v56 = vsel %vm113_vm4, %v43_v48, %v66_v47 }
  0x9e   :  { %v38_v51 = vmul.f32 0.00390625, %v37_v49 }
  0xa0   :  { %v114_v54 = vsel %vm113_vm4, %v38_v51, %v61_v50  ;;  %v112_v55 = vpop.xlane.xlu1 %111 }
  0xa1   :  { %v89_v57 = vpop.xlane.xlu0 %88  ;;  %v116_v58 = vsel %vm115_vm5, %v114_v54, %v84_v52 }
  0xa2   :  { %v120_v59 = vsel %vm115_vm5, %v119_v56, %v89_v57  ;;  %v118_v60 = vsel %vm117_vm6, %v116_v58, %v107_v53 }
  0xa3   :  { %v121_v61 = vsel %vm117_vm6, %v120_v59, %v112_v55  ;;  %465 = vmatmul.mubr.msk.f32.vlgmr.msra.gmra.mrb[0].mxu0 %vm133_vm1, %v118_v60 }
  0xa4   :  { %472 = vmatmul.mubr.msk.f32.vlgmr.msra.gmra.mrb[0].mxu1 %vm133_vm1, %v121_v61  ;;  %476 = vmatprep.mubr.msk.f32.mxu0 %vm507_vm3, %v508_v43 }
  0xa5   :  { %475 = vmatpush3.xpose.msk.msra.mxu0 %vm296_vm7, %v124_v62 }
 0x176   :  { %v209_v0 = vpop.f32.mrb[0].mxu0 }
 0x177   :  { %v210_v1 = vadd.f32 %v442_v63, %v209_v0  ;;  %v466_v2 = vpop.f32.mrb[1].mxu0  ;;  %v283_v3 = vpop.f32.mrb[0].mxu1 }
 0x178   :  { %v284_v4 = vadd.f32 %v442_v63, %v283_v3  ;;  %v473_v5 = vpop.f32.mrb[1].mxu1 }
 0x179   :  { %v213_v6 = vmax.f32 %v210_v1, 0.0 }
 0x17a   :  { %v287_v8 = vmax.f32 %v284_v4, 0.0 }
 0x17c   :  { %v288_v9 = vadd.f32 %v287_v8, %v213_v6 }
 0x17e   :  { %477 = vmatmul.mubr.msk.f32.vlgmr.msra.gmra.mrb[2].mxu0 %vm296_vm7, %v288_v9 }
 0x251   :  { %v369_v17 = vpop.f32.mrb[2].mxu0 }
 0x252   :  { %v370_v18 = vadd.f32 %v369_v17, %v294_v15  ;;  %v478_v19 = vpop.f32.mrb[3].mxu0 }
 0x254   :  { %v451_v20 = vmul.f32 -1.442695, %v370_v18 }
 0x256   :  { %501 = vpow2.f32 %v451_v20 }
 0x260   :  { %v502_v21 = vpop.eup %501 }
 0x261   :  { %v376_v22 = vadd.f32 1.0, %v502_v21 }
 0x263   :  { %503 = vrcp.f32 %v376_v22 }
 0x26d   :  { %v504_v23 = vpop.eup %503 }
 0x26e   :  { %395 = vperm.xlu1 %497, %v504_v23   ;;  %381 = vperm.xlu0 %496, %v504_v23  }
 0x272   :  { %498 = vset.pattern.permute.xlu1 %v511_v24  ;;  %500 = vset.pattern.permute.xlu0 %v512_v25 }
 0x273   :  { %409 = vperm.xlu1 %498, %v504_v23  }
 0x277   :  { %499 = vset.pattern.permute.xlu1 %v512_v25 }
 0x278   :  { %423 = vperm.xlu1 %499, %v504_v23  }
 0x2ed   :  { %v396_v31 = vpop.permute.xlu1 %395  ;;  %v382_v32 = vpop.permute.xlu0 %381 }
 0x2ee   :  { %v403_v33 = vrot.slane %v396_v31, %v388_v29  ;;  %v389_v34 = vrot.slane %v382_v32, %v388_v29 }
 0x2f0   :  { %v405_v35 = vmul.f32 %v403_v33, %v393_v30  ;;  %v391_v36 = vmul.f32 %v389_v34, %v563_v16 }
 0x2f2   :  { %406 = vst [vmem:[%s629_s5 + $0x4] sm:$0xf] %v405_v35  ;;  %392 = vst [vmem:[%s629_s5] sm:$0xf] %v391_v36  ;;  %v410_v37 = vpop.permute.xlu1 %409 }
 0x2f3   :  { %v417_v38 = vrot.slane %v410_v37, %v388_v29 }
 0x2f7   :  { %v424_v40 = vpop.permute.xlu1 %423 }
 0x2f8   :  { %v431_v41 = vrot.slane %v424_v40, %v388_v29 }
 0x2f9   :  { %v407_v7 = vld [vmem:[%s624_s0 + $0x8] sm:$0xf] }
 0x2fa   :  { %v419_v39 = vmul.f32 %v417_v38, %v407_v7 }
 0x2fc   :  { %420 = vst [vmem:[%s629_s5 + $0x8] sm:$0xf] %v419_v39 }
 0x303   :  { %v421_v16 = vld [vmem:[%s624_s0 + $0xc] sm:$0xf] }
 0x304   :  { %v433_v42 = vmul.f32 %v431_v41, %v421_v16 }
 0x306   :  { %434 = vst [vmem:[%s629_s5 + $0xc] sm:$0xf] %v433_v42 }

</bundles_post_ra>
